<compile_context>
chip_gen: v7x
topology: tpu7x:2x2x1
jax: 0.10.0
libtpu: 0.0.40
codegen_flags: <defaults>
</compile_context>

<pallas_src>
import jax
import jax.numpy as jnp
from jax.experimental import pallas as pl
from jax.experimental.pallas import tpu as pltpu


def _copy_kernel(x_ref, out_ref):
    # Fast path: x_ref is a (TB, H) slab of the flattened (B, S*H) input that
    # the index_map already pointed at token 0 (grid j=0) or token S-1 (j=1);
    # out_ref is the matching (TB, H) half of the (B, 2H) output.
    out_ref[...] = x_ref[...]


def _gather_kernel(x_ref, out_ref):
    # Fallback path (H not a multiple of 128): x_ref is a full (TB, S, H)
    # block; select rows 0 and S-1 in-kernel.
    s = x_ref.shape[1]
    h = x_ref.shape[2]
    out_ref[:, :h] = x_ref[:, 0, :]
    out_ref[:, h:] = x_ref[:, s - 1, :]


def _pick_batch_tile(batch, row_elems, itemsize):
    """Largest multiple-of-8 batch tile whose (TB, row_elems) buffer is ~4 MiB."""
    if batch <= 8:
        return batch
    target_bytes = 4 * 1024 * 1024
    tb = target_bytes // max(1, row_elems * itemsize)
    tb = max(8, (tb // 8) * 8)
    return batch if tb >= batch else tb


def concat_pooling(last_hidden_state, attention_mask=None):
    """Pallas TPU implementation of ConcatPooling.forward.

    Returns concat([x[:, 0, :], x[:, -1, :]], axis=1) with shape (B, 2*H).
    """
    del attention_mask  # dead code in the reference forward (never used)
    b, s, h = last_hidden_state.shape
    dtype = last_hidden_state.dtype
    itemsize = jnp.dtype(dtype).itemsize
    out_shape = jax.ShapeDtypeStruct((b, 2 * h), dtype)

    if h % 128 == 0:
        # Fast path: read only the first/last token rows via BlockSpec indexing
        # on a free contiguous (B, S*H) view of the input.
        tb = _pick_batch_tile(b, h, itemsize)
        x2d = last_hidden_state.reshape(b, s * h)  # contiguous view, no copy
        cost = pl.CostEstimate(
            flops=0, transcendentals=0, bytes_accessed=4 * b * h * itemsize)
        return pl.pallas_call(
            _copy_kernel,
            out_shape=out_shape,
            grid=(pl.cdiv(b, tb), 2),
            in_specs=[pl.BlockSpec((tb, h), lambda i, j: (i, j * (s - 1)))],
            out_specs=pl.BlockSpec((tb, h), lambda i, j: (i, j)),
            compiler_params=pltpu.CompilerParams(
                dimension_semantics=("parallel", "parallel")),
            cost_estimate=cost,
        )(x2d)

    # Fallback for lane-unaligned hidden sizes: full (S, H) blocks per batch
    # tile (always a legal block shape), selecting rows 0 / S-1 in-kernel.
    # TODO(synk): this path reads the full sequence; real transformer hidden
    # sizes are multiples of 128, so the fast path above is the one that matters.
    tb = _pick_batch_tile(b, s * h, itemsize)
    cost = pl.CostEstimate(
        flops=0, transcendentals=0,
        bytes_accessed=(b * s * h + 2 * b * h) * itemsize)
    return pl.pallas_call(
        _gather_kernel,
        out_shape=out_shape,
        grid=(pl.cdiv(b, tb),),
        in_specs=[pl.BlockSpec((tb, s, h), lambda i: (i, 0, 0))],
        out_specs=pl.BlockSpec((tb, 2 * h), lambda i: (i, 0)),
        compiler_params=pltpu.CompilerParams(
            dimension_semantics=("parallel",)),
        cost_estimate=cost,
    )(last_hidden_state)


if __name__ == "__main__":
    key = jax.random.PRNGKey(0)
    k1, k2 = jax.random.split(key)

    # Fast path: lane-aligned hidden size (H % 128 == 0), bf16 end-to-end.
    B, S, H = 4, 8, 128
    x = jax.random.normal(k1, (B, S, H), dtype=jnp.float32).astype(jnp.bfloat16)
    mask = jnp.ones((B, S), dtype=jnp.int32)
    out = jax.block_until_ready(concat_pooling(x, mask))
    ref = jnp.concatenate([x[:, 0, :], x[:, -1, :]], axis=1)
    assert out.shape == (B, 2 * H) and out.dtype == x.dtype
    assert jnp.array_equal(out, ref)

    # Fallback path: small, lane-unaligned hidden size.
    B2, S2, H2 = 2, 8, 32
    x2 = jax.random.normal(k2, (B2, S2, H2), dtype=jnp.float32)
    out2 = jax.block_until_ready(
        concat_pooling(x2, jnp.ones((B2, S2), dtype=jnp.int32)))
    ref2 = jnp.concatenate([x2[:, 0, :], x2[:, -1, :]], axis=1)
    assert out2.shape == (B2, 2 * H2)
    assert jnp.array_equal(out2, ref2)

    print("KERNEL_OK")
</pallas_src>

<mosaic_0001>
module attributes {stable_mosaic.version = 11 : i64} {
  func.func @_copy_kernel(%arg0: i32, %arg1: i32, %arg2: memref<4x128xbf16, #tpu.memory_space<vmem>>, %arg3: memref<4x128xbf16, #tpu.memory_space<vmem>>) attributes {dimension_semantics = [#tpu.dimension_semantics<parallel>, #tpu.dimension_semantics<parallel>], iteration_bounds = array<i64: 1, 2>, scalar_prefetch = 0 : i64, scratch_operands = 0 : i64, tpu.core_type = #tpu.core_type<tc>, window_params = [{transform_indices = @transform_0, window_bounds = array<i64: 4, 128>}, {transform_indices = @transform_1, window_bounds = array<i64: 4, 128>}]} {
    %c0 = arith.constant 0 : index
    %c0_0 = arith.constant 0 : index
    %0 = vector.load %arg2[%c0, %c0_0] : memref<4x128xbf16, #tpu.memory_space<vmem>>, vector<4x128xbf16>
    %c0_1 = arith.constant 0 : index
    %c0_2 = arith.constant 0 : index
    %1 = vector.load %arg3[%c0_1, %c0_2] : memref<4x128xbf16, #tpu.memory_space<vmem>>, vector<4x128xbf16>
    tpu.vector_store %arg3[%c0_1, %c0_2], %0 {strides = array<i32>} : memref<4x128xbf16, #tpu.memory_space<vmem>>, vector<4x128xbf16>,
    return
  }
  func.func @transform_0(%arg0: i32, %arg1: i32) -> (i32, i32) {
    %c7_i32 = arith.constant 7 : i32
    %0 = arith.muli %arg1, %c7_i32 : i32
    %c0_i32 = arith.constant 0 : i32
    return %arg0, %0 : i32, i32
  }
  func.func @transform_1(%arg0: i32, %arg1: i32) -> (i32, i32) {
    %c0_i32 = arith.constant 0 : i32
    return %arg0, %arg1 : i32, i32
  }
}

</mosaic_0001>

<bundles_post_ra>
// kernel: tpu_custom_call.1
= control target key start
LH: loop header
LB: loop body
LE: loop exit
PB: predicated region body
PF: predicated region fallthrough
CT: control target
= control target key end

     0   :  { %6 = vsyncpa [#allocation3], 0  ;;  %s700_s0 = inlined_call_operand.hbm [shape: bf16[4,1024], index: 0, kind: input, shape index: {}]   ;;  %s701_s1 = inlined_call_operand.hbm [shape: bf16[4,256], index: 1, kind: output, shape index: {}]  }
   0x1   :  { %8 = vsyncpa [#allocation3 + $0x1], 0 }
   0x2   :  { %9 = vsyncpa [#allocation4], 0 }
   0x3   :  { %11 = vsyncpa [#allocation4 + $0x1], 0  ;;  %s505_s6 = smov 0   ;;  %s507_s7 = smov 0  }
   0x4   :  { %s509_s8 = smov 0   ;;  %s511_s9 = smov 0  }
   0x5   :  { %s513_s10 = smov 0   ;;  %s515_s11 = smov 0  }
   0x6   :  { %s517_s12 = smov 0   ;;  %s519_s13 = smov 0  }
   0x7   :  { %s521_s14 = smov 0  }
   0x8 LB: > { %s255_s15 = sadd.s32 4294967295, %s491_s14   ;;  %s256_s16 = sadd.s32 4294967294, %s491_s14   ;;  %s491_s14 = sphi %s521_s14, %s17_s14   ;;  %s487_s13 = sphi %s519_s13, %s718_s13   ;;  %s483_s12 = sphi %s517_s12, %s717_s12   ;;  %s479_s11 = sphi %s515_s11, %s716_s11   ;;  %s475_s10 = sphi %s513_s10, %s715_s10   ;;  %s471_s9 = sphi %s511_s9, %s714_s9   ;;  %s467_s8 = sphi %s509_s8, %s713_s8   ;;  %s463_s7 = sphi %s507_s7, %s712_s7   ;;  %s459_s6 = sphi %s505_s6, %s711_s6  }
   0x9   : > { %s26_s17 = sadd.s32 1, %s487_s13  ;;  %s33_s18 = smul.u32 7, %s487_s13 }
   0xa   : > { %p27_p0 = scmp.ge.s32.totalorder %s26_s17, 2  ;;  %s40_s19 = sadd.s32 1, %s479_s11 }
   0xb   : > { %p47_p1 = scmp.ne.s32.totalorder %s479_s11, %s475_s10  ;;  %p48_p2 = scmp.eq.s32.totalorder %s491_s14, 0 }
   0xc   : > { %s720_s17 = smov (%p27_p0, %s26_s17), 0  ;;  %p53_p4 = scmp.ne.s32.totalorder %s475_s10, %s471_s9 }
   0xd   : > { %p558_p3 = por %p48_p2, %p47_p1  ;;  %s34_s21 = smul.u32 7, %s720_s17 }
   0xe   : > { %p54_p5 = scmp.eq.s32.totalorder %s255_s15, 0  ;;  %s64_s22 = ssub.s32 %s487_s13, %s720_s17 }
   0xf   : > { %s68_s23 = sadd.s32 1, %s467_s8  ;;  %s36_s24 = ssub.s32 %s33_s18, %s34_s21 }
  0x10   : > { %p567_p6 = por %p54_p5, %p53_p4  ;;  %p38_p7 = scmp.eq.s32.totalorder %s36_s24, 0 }
  0x11   : > { %p66_p8 = scmp.eq.s32.totalorder %s64_s22, 0  ;;  %p78_p9 = scmp.ne.s32.totalorder %s467_s8, %s463_s7 }
  0x12   : > { %p79_p10 = scmp.eq.s32.totalorder %s255_s15, 1  ;;  %p84_p12 = scmp.ne.s32.totalorder %s463_s7, %s459_s6 }
  0x13   : > { %s574_s26 = scalar_select %p38_p7, %s479_s11, %s40_s19  }
  0x14   : > { %s577_s27 = scalar_select %p66_p8, %s467_s8, %s68_s23  }
  0x15   : > { %p579_p11 = por %p79_p10, %p78_p9  ;;  %p85_p13 = scmp.eq.s32.totalorder %s256_s16, 1 }
  0x16   : > { %p281_p1 = scmp.lt.s32.totalorder %s491_s14, 2  ;;  %s105_s29 = sand.u32 1, %s479_s11  }
  0x17   : > { %s705_s28 = scalar_select %p579_p11, 1, 0 }
  0x18   : > { %p588_p2 = por %p85_p13, %p84_p12  ;;  %s259_s2 = sshll.u32 %s105_s29, 1 }
  0x19   : > { %s268_s3 = smul.u32 224, %s487_s13  ;;  %p595_p4 = pnand %p281_p1, %p558_p3 }
  0x1a   : > { %s706_s30 = scalar_select %p588_p2, 1, 0 }
  0x1b   : > { %s602_s15 = scalar_lea.hbm %s700_s0, %s268_s3  ;;  %s109_s16 = scalar_lea.vmem [#allocation2], %s259_s2 }
  0x1c   : > { %s119_s18 = sshll.u32 %s109_s16, 4  ;;  %s106_s19 = scalar_lea.sflag [#allocation3], %s105_s29  ;;  %s604_s18 = int_to_ptr.vmem [resolvable:$true] %s119_s18 }
  0x1d   : > { %s355_s20 = scalar_lea.hbm %s602_s15, 32  ;;  %p357_p5 = pneg %p595_p4 }
  0x1e   : > { %p356_p3 = scmp.ne.s32.totalorder %s602_s15, %s355_s20  ;;  %s360_s23 = scalar_lea.hbm %s700_s0, 256 }
  0x1f   : > { %p361_p9 = scmp.lt.u32.totalorder %s602_s15, %s700_s0  ;;  %p362_p10 = scmp.lt.u32.totalorder %s360_s23, %s355_s20 }
  0x20   : > { %p358_p7 = pnand %p357_p5, %p356_p3  ;;  %p364_p13 = scmp.lt.u32.totalorder %s355_s20, %s602_s15 }
  0x21   : > { %p363_p12 = por %p362_p10, %p361_p9 }
  0x22   : > { %p359_p8 = pneg %p358_p7 }
  0x23   : > { %p365_p1 = por %p364_p13, %p363_p12 }
  0x25   : > { %p366_p0 = pnand %p365_p1, %p359_p8 }
  0x27   : > { %369 = shalt.err (!%p366_p0)
}
  0x28   : > { %s370_s29 = scalar_lea.vmem %s604_s18, 32  ;;  %s493_s2 = smov [#allocation2]  }
  0x29   : > { %p371_p3 = scmp.ne.s32.totalorder %s604_s18, %s370_s29  ;;  %s375_s5 = sshll.u32 %s493_s2, 4  ;;  %s376_s5 = int_to_ptr.vmem [resolvable:$false] %s375_s5 }
  0x2a   : > { %s377_s9 = scalar_lea.vmem %s376_s5, 64  ;;  %p378_p11 = scmp.lt.s32.totalorder %s604_s18, %s376_s5 }
  0x2b   : > { %p373_p7 = pnand %p371_p3, %p357_p5  ;;  %p379_p9 = scmp.lt.s32.totalorder %s377_s9, %s370_s29 }
  0x2d   : > { %p374_p2 = pneg %p373_p7  ;;  %p380_p10 = por %p379_p9, %p378_p11 }
  0x2f   : > { %p381_p12 = pnand %p380_p10, %p374_p2 }
  0x31   : > { %384 = shalt.err (!%p381_p12)
}
  0x32   : > { %276 = dma.hbm_to_vmem [thread:$0]  (!%p595_p4), %s602_s15, 32, %s604_s18, %s106_s19  }
  0x33   : > { %p261_p0 = scmp.ge.s32.totalorder %s491_s14, 1  ;;  %p124_p8 = scmp.lt.s32.totalorder %s491_s14, 3 }
  0x35   : > { %p125_p5 = pnand %p261_p0, %p124_p8 }
  0x36   : > { %s130_s16 = sand.u32 (!%p125_p5), 1, %s475_s10  }
  0x37   : > { %128 = sbr.rel (%p125_p5) target bundleno = 89 (0x59), region = 24  ;;  %s262_s20 = sshll.u32 (!%p125_p5), %s130_s16, 1 }
  0x38   : > { %s131_s21 = scalar_lea.sflag (!%p125_p5), [#allocation3], %s130_s16  ;;  %s134_s22 = scalar_lea.vmem (!%p125_p5), [#allocation2], %s262_s20 }
  0x3e   : > { %450 = dma.done.wait (%p567_p6), %s131_s21, 32  }
  0x3f   : > { %452 = vsyncadd (%p567_p6), %s131_s21, 4294967264  ;;  %s150_s4 = sand.u32 1, %s463_s7   ;;  %s265_s23 = sshll.u32 %s483_s12, 5  ;;  %v154_v0 = vld [vmem:[%s134_s22] sm:$0x3] }
  0x40   : > { %s263_s15 = sshll.u32 %s150_s4, 1  ;;  %s645_s29 = scalar_lea.hbm %s701_s1, %s265_s23 }
  0x41   : > { %s152_s18 = scalar_lea.vmem [#allocation5], %s263_s15  ;;  %s157_s25 = scalar_lea.sflag [#allocation4], %s150_s4 }
  0x42   : > { %s172_s19 = sshll.u32 %s152_s18, 4  ;;  %155 = vst [vmem:[%s152_s18] sm:$0x3] %v154_v0  ;;  %p708_p11 = scmp.ne.s32.totalorder %s705_s28, 0  ;;  %s640_s19 = int_to_ptr.vmem [resolvable:$true] %s172_s19 }
  0x43   : > { %s385_s2 = scalar_lea.vmem %s640_s19, 32  ;;  %s494_s5 = smov [#allocation5]  }
  0x44   : > { %p386_p6 = scmp.ne.s32.totalorder %s640_s19, %s385_s2  ;;  %s389_s12 = sshll.u32 %s494_s5, 4  ;;  %s390_s12 = int_to_ptr.vmem [resolvable:$false] %s389_s12 }
  0x45   : > { %s391_s9 = scalar_lea.vmem %s390_s12, 64  ;;  %p392_p13 = scmp.lt.s32.totalorder %s640_s19, %s390_s12 }
  0x46   : > { %p387_p2 = pnand %p386_p6, %p708_p11  ;;  %p393_p1 = scmp.lt.s32.totalorder %s391_s9, %s385_s2 }
  0x48   : > { %p388_p4 = pneg %p387_p2  ;;  %p394_p3 = por %p393_p1, %p392_p13 }
  0x4a   : > { %p395_p7 = pnand %p394_p3, %p388_p4 }
  0x4c   : > { %398 = shalt.err (!%p395_p7)
}
  0x4d   : > { %s399_s16 = scalar_lea.hbm %s645_s29, 32  ;;  %s403_s22 = scalar_lea.hbm %s701_s1, 64 }
  0x4e   : > { %p400_p9 = scmp.ne.s32.totalorder %s645_s29, %s399_s16  ;;  %p404_p0 = scmp.lt.u32.totalorder %s645_s29, %s701_s1 }
  0x4f   : > { %p405_p8 = scmp.lt.u32.totalorder %s403_s22, %s399_s16  ;;  %p407_p6 = scmp.lt.u32.totalorder %s399_s16, %s645_s29 }
  0x50   : > { %p401_p10 = pnand %p400_p9, %p708_p11 }
  0x51   : > { %p406_p5 = por %p405_p8, %p404_p0 }
  0x52   : > { %p402_p12 = pneg %p401_p10 }
  0x53   : > { %p408_p2 = por %p407_p6, %p406_p5 }
  0x55   : > { %p409_p4 = pnand %p408_p2, %p402_p12 }
  0x57   : > { %412 = shalt.err (!%p409_p4)
}
  0x58   : > { %271 = dma.vmem_to_hbm [thread:$0]  (%p708_p11), %s640_s19, 32, %s645_s29, %s157_s25  }
  0x59 PF: > { %s184_s18 = sand.u32 1, %s459_s6   ;;  %p709_p13 = scmp.ne.s32.totalorder %s706_s30, 0 }
  0x5a   : > { %p710_p1 = scmp.ge.s32.totalorder %s491_s14, 2  ;;  %s185_s23 = scalar_lea.sflag [#allocation4], %s184_s18 }
  0x5c   : > { %p278_p3 = pnand %p710_p1, %p709_p13 }
  0x5e   : > { %454 = dma.done.wait (!%p278_p3), %s185_s23, 32  }
  0x5f   : > { %456 = vsyncadd (!%p278_p3), %s185_s23, 4294967264  ;;  %s17_s14 = sadd.s32 1, %s491_s14   ;;  %s711_s6 = smov %s463_s7 }
  0x60   : > { %p14_p7 = scmp.ge.s32.totalorder %s17_s14, 4   ;;  %s712_s7 = smov %s467_s8 }
  0x61   : > { %s713_s8 = smov %s577_s27  ;;  %s714_s9 = smov %s475_s10 }
  0x62   : > { %s715_s10 = smov %s479_s11  ;;  %s716_s11 = smov %s574_s26 }
  0x63   : > { %s717_s12 = smov %s487_s13  ;;  %s718_s13 = smov %s720_s17 }
  0x64   :  { %16 = sbr.rel (!%p14_p7) target bundleno = 8 (0x8), region = 69 }
  0x6b   :  { %190 = vsyncpa [#allocation3], 1 }
  0x6c   :  { %192 = vsyncpa [#allocation3 + $0x1], 1 }
  0x6d   :  { %193 = vsyncpa [#allocation4], 1 }
  0x6e   :  { %195 = vsyncpa [#allocation4 + $0x1], 1 }

</bundles_post_ra>
